<compile_context>
chip_gen: v7x
topology: tpu7x:2x2x1
jax: 0.10.0
libtpu: 0.0.40
codegen_flags: <defaults>
</compile_context>

<pallas_src>
import jax
import jax.numpy as jnp
from jax.experimental import pallas as pl
from jax.experimental.pallas import tpu as pltpu

LANE = 128        # lane width (batch-tile granularity)
TB_TARGET = 1024  # target batch-tile width in lanes (multiple of 128)


def mlp_kernel(x_ref, w1_ref, b1_ref, wh_ref, bh_ref, w7_ref, b7_ref, o_ref):
    """One batch tile of the fused MLP, batch on the lane axis.

    x_ref : (F, TB)       bf16   (batch tile on lanes)
    w1_ref: (32, F)       bf16    b1_ref: (32, 1)    f32
    wh_ref: (5, 32, 32)   bf16    bh_ref: (5, 32, 1) f32   (stacked hidden layers)
    w7_ref: (1, 32)       bf16    b7_ref: (1, 1)     f32
    o_ref : (1, TB)       f32    (lane-dense output row)
    """

    def layer(w_bf16, h_bf16, b_f32, act):
        # MXU matmul in bf16 with f32 accumulation; bias + Hardtanh in f32 (VPU).
        y = jnp.dot(w_bf16, h_bf16, preferred_element_type=jnp.float32) + b_f32
        if act:
            y = jnp.clip(y, -1.0, 1.0)  # Hardtanh (default min=-1, max=1)
        return y

    h = layer(w1_ref[...], x_ref[...], b1_ref[...], True)            # (32, TB)
    # Statically unrolled loop over the 5 stacked (32,32) hidden layers.
    for l in range(wh_ref.shape[0]):
        h = layer(wh_ref[l], h.astype(jnp.bfloat16), bh_ref[l], True)
    y = layer(w7_ref[...], h.astype(jnp.bfloat16), b7_ref[...], False)  # (1, TB)
    o_ref[...] = y.astype(o_ref.dtype)


def prepare_params(params):
    """One-time prep: keep PyTorch (out, in) orientation, cast weights to bf16,
    stack hidden layers, biases as f32 column vectors (broadcast over lanes)."""
    w1 = jnp.asarray(params[0][0]).astype(jnp.bfloat16)               # (32, F)
    b1 = jnp.asarray(params[0][1])[:, None].astype(jnp.float32)       # (32, 1)
    wh = jnp.stack([jnp.asarray(W) for (W, _) in params[1:6]]
                   ).astype(jnp.bfloat16)                             # (5, 32, 32)
    bh = jnp.stack([jnp.asarray(b)[:, None] for (_, b) in params[1:6]]
                   ).astype(jnp.float32)                              # (5, 32, 1)
    w7 = jnp.asarray(params[6][0]).astype(jnp.bfloat16)               # (1, 32)
    b7 = jnp.asarray(params[6][1])[:, None].astype(jnp.float32)       # (1, 1)
    return (w1, b1, wh, bh, w7, b7)


def _pick_tile(B):
    """Static (trace-time) batch tiling: big tiles, >=2 equal steps when possible."""
    b128 = LANE * ((B + LANE - 1) // LANE)
    if b128 >= 2 * LANE:
        tb = min(TB_TARGET, b128 // 2)      # >=2 steps so v7x megacore has work
        tb = max(LANE, (tb // LANE) * LANE)
    else:
        tb = LANE
    n_tiles = (b128 + tb - 1) // tb
    return tb, n_tiles, n_tiles * tb


@jax.jit
def neural_net_forward(x, prepped):
    w1, b1, wh, bh, w7, b7 = prepped
    B, F = x.shape
    tb, n_tiles, B_pad = _pick_tile(B)

    # Static check: no pad copy when the batch is already tile-aligned.
    if B_pad != B:
        x = jnp.pad(x, ((0, B_pad - B), (0, 0)))
    # One fused wrapper pass: batch onto lanes + cast to bf16.
    x_t = x.T.astype(jnp.bfloat16)                                    # (F, B_pad)

    in_specs = [
        pl.BlockSpec((F, tb), lambda i: (0, i)),       # streamed batch tiles
        pl.BlockSpec(w1.shape, lambda i: (0, 0)),      # weights VMEM-resident
        pl.BlockSpec(b1.shape, lambda i: (0, 0)),
        pl.BlockSpec(wh.shape, lambda i: (0, 0, 0)),
        pl.BlockSpec(bh.shape, lambda i: (0, 0, 0)),
        pl.BlockSpec(w7.shape, lambda i: (0, 0)),
        pl.BlockSpec(b7.shape, lambda i: (0, 0)),
    ]
    out_specs = pl.BlockSpec((1, tb), lambda i: (0, i))  # lane-dense output row

    out = pl.pallas_call(
        mlp_kernel,
        out_shape=jax.ShapeDtypeStruct((1, B_pad), jnp.float32),
        grid=(n_tiles,),
        in_specs=in_specs,
        out_specs=out_specs,
        compiler_params=pltpu.CompilerParams(
            dimension_semantics=("parallel",)),          # megacore sharding on v7x
    )(x_t, w1, b1, wh, bh, w7, b7)

    return out[0, :B][:, None]                           # (B, 1) like PyTorch


def init_params(key, input_size):
    """Deterministic init mimicking PyTorch Linear default U(-1/sqrt(fan_in), ...)."""
    dims = [(input_size, 32), (32, 32), (32, 32), (32, 32),
            (32, 32), (32, 32), (32, 1)]
    params = []
    for (fan_in, fan_out) in dims:
        key, kw, kb = jax.random.split(key, 3)
        bound = 1.0 / jnp.sqrt(float(fan_in))
        W = jax.random.uniform(kw, (fan_out, fan_in), jnp.float32, -bound, bound)
        b = jax.random.uniform(kb, (fan_out,), jnp.float32, -bound, bound)
        params.append((W, b))
    return params


def reference_forward(x, params):
    """Pure-JAX f32 reference of the PyTorch forward."""
    h = x
    for i, (W, b) in enumerate(params):
        h = h @ W.T + b
        if i < len(params) - 1:
            h = jnp.clip(h, -1.0, 1.0)
    return h


if __name__ == "__main__":
    key = jax.random.PRNGKey(0)
    key, kx = jax.random.split(key)

    batch = 512          # -> 2 grid steps of TB=256 (exercises the batch pipeline)
    input_size = 16
    x = jax.random.normal(kx, (batch, input_size), jnp.float32)

    params = init_params(key, input_size)
    prepped = prepare_params(params)   # one-time param prep (cast/stack)

    out = neural_net_forward(x, prepped)
    out = jax.block_until_ready(out)

    ref = reference_forward(x, params)
    assert out.shape == (batch, 1), out.shape
    # bf16 matmul inputs (activations clipped to [-1,1]) => relaxed tolerance.
    assert jnp.allclose(out, ref, atol=5e-2, rtol=5e-2), (
        f"max abs err {jnp.max(jnp.abs(out - ref))}")

    print("KERNEL_OK")
</pallas_src>

<mosaic_0001>
module attributes {stable_mosaic.version = 11 : i64} {
  func.func @mlp_kernel(%arg0: i32, %arg1: memref<16x256xbf16, #tpu.memory_space<vmem>>, %arg2: memref<32x16xbf16, #tpu.memory_space<vmem>>, %arg3: memref<32x1xf32, #tpu.memory_space<vmem>>, %arg4: memref<5x32x32xbf16, #tpu.memory_space<vmem>>, %arg5: memref<5x32x1xf32, #tpu.memory_space<vmem>>, %arg6: memref<1x32xbf16, #tpu.memory_space<vmem>>, %arg7: memref<1x1xf32, #tpu.memory_space<vmem>>, %arg8: memref<1x256xf32, #tpu.memory_space<vmem>>) attributes {dimension_semantics = [#tpu.dimension_semantics<parallel>], iteration_bounds = array<i64: 2>, scalar_prefetch = 0 : i64, scratch_operands = 0 : i64, tpu.core_type = #tpu.core_type<tc>, window_params = [{transform_indices = @transform_0, window_bounds = array<i64: 16, 256>}, {pipeline_mode = #tpu.pipeline_mode<synchronous>, transform_indices = @transform_1, window_bounds = array<i64: 32, 16>}, {pipeline_mode = #tpu.pipeline_mode<synchronous>, transform_indices = @transform_2, window_bounds = array<i64: 32, 1>}, {pipeline_mode = #tpu.pipeline_mode<synchronous>, transform_indices = @transform_3, window_bounds = array<i64: 5, 32, 32>}, {pipeline_mode = #tpu.pipeline_mode<synchronous>, transform_indices = @transform_4, window_bounds = array<i64: 5, 32, 1>}, {pipeline_mode = #tpu.pipeline_mode<synchronous>, transform_indices = @transform_5, window_bounds = array<i64: 1, 32>}, {pipeline_mode = #tpu.pipeline_mode<synchronous>, transform_indices = @transform_6, window_bounds = array<i64: 1, 1>}, {transform_indices = @transform_7, window_bounds = array<i64: 1, 256>}]} {
    %c0 = arith.constant 0 : index
    %c0_0 = arith.constant 0 : index
    %0 = vector.load %arg2[%c0, %c0_0] : memref<32x16xbf16, #tpu.memory_space<vmem>>, vector<32x16xbf16>
    %c0_1 = arith.constant 0 : index
    %c0_2 = arith.constant 0 : index
    %1 = vector.load %arg1[%c0_1, %c0_2] : memref<16x256xbf16, #tpu.memory_space<vmem>>, vector<16x256xbf16>
    %c0_3 = arith.constant 0 : index
    %c0_4 = arith.constant 0 : index
    %2 = vector.load %arg3[%c0_3, %c0_4] : memref<32x1xf32, #tpu.memory_space<vmem>>, vector<32x1xf32>
    %cst = arith.constant dense<0.000000e+00> : vector<32x256xf32>
    %3 = tpu.matmul %0, %1, %cst {dimension_numbers = #tpu.dot_dimension_numbers<[1], [0], [0], [1], [0, 0, 1, 1], [], []>} : vector<32x16xbf16>, vector<16x256xbf16>, vector<32x256xf32> -> vector<32x256xf32>
    %4 = vector.broadcast %2 : vector<32x1xf32> to vector<32x256xf32>
    %5 = arith.addf %3, %4 : vector<32x256xf32>
    %cst_5 = arith.constant -1.000000e+00 : f32
    %cst_6 = arith.constant 1.000000e+00 : f32
    %6 = vector.broadcast %cst_5 : f32 to vector<32x256xf32>
    %7 = arith.maximumf %6, %5 : vector<32x256xf32>
    %8 = vector.broadcast %cst_6 : f32 to vector<32x256xf32>
    %9 = arith.minimumf %8, %7 : vector<32x256xf32>
    %c0_7 = arith.constant 0 : index
    %c0_8 = arith.constant 0 : index
    %c0_9 = arith.constant 0 : index
    %10 = vector.load %arg4[%c0_7, %c0_8, %c0_9] : memref<5x32x32xbf16, #tpu.memory_space<vmem>>, vector<1x32x32xbf16>
    %11 = vector.shape_cast %10 : vector<1x32x32xbf16> to vector<32x32xbf16>
    %12 = arith.truncf %9 : vector<32x256xf32> to vector<32x256xbf16>
    %c0_10 = arith.constant 0 : index
    %c0_11 = arith.constant 0 : index
    %c0_12 = arith.constant 0 : index
    %13 = vector.load %arg5[%c0_10, %c0_11, %c0_12] : memref<5x32x1xf32, #tpu.memory_space<vmem>>, vector<1x32x1xf32>
    %14 = vector.shape_cast %13 : vector<1x32x1xf32> to vector<32x1xf32>
    %cst_13 = arith.constant dense<0.000000e+00> : vector<32x256xf32>
    %15 = tpu.matmul %11, %12, %cst_13 {dimension_numbers = #tpu.dot_dimension_numbers<[1], [0], [0], [1], [0, 0, 1, 1], [], []>} : vector<32x32xbf16>, vector<32x256xbf16>, vector<32x256xf32> -> vector<32x256xf32>
    %16 = vector.broadcast %14 : vector<32x1xf32> to vector<32x256xf32>
    %17 = arith.addf %15, %16 : vector<32x256xf32>
    %cst_14 = arith.constant -1.000000e+00 : f32
    %cst_15 = arith.constant 1.000000e+00 : f32
    %18 = vector.broadcast %cst_14 : f32 to vector<32x256xf32>
    %19 = arith.maximumf %18, %17 : vector<32x256xf32>
    %20 = vector.broadcast %cst_15 : f32 to vector<32x256xf32>
    %21 = arith.minimumf %20, %19 : vector<32x256xf32>
    %c1 = arith.constant 1 : index
    %c0_16 = arith.constant 0 : index
    %c0_17 = arith.constant 0 : index
    %22 = vector.load %arg4[%c1, %c0_16, %c0_17] : memref<5x32x32xbf16, #tpu.memory_space<vmem>>, vector<1x32x32xbf16>
    %23 = vector.shape_cast %22 : vector<1x32x32xbf16> to vector<32x32xbf16>
    %24 = arith.truncf %21 : vector<32x256xf32> to vector<32x256xbf16>
    %c1_18 = arith.constant 1 : index
    %c0_19 = arith.constant 0 : index
    %c0_20 = arith.constant 0 : index
    %25 = vector.load %arg5[%c1_18, %c0_19, %c0_20] : memref<5x32x1xf32, #tpu.memory_space<vmem>>, vector<1x32x1xf32>
    %26 = vector.shape_cast %25 : vector<1x32x1xf32> to vector<32x1xf32>
    %cst_21 = arith.constant dense<0.000000e+00> : vector<32x256xf32>
    %27 = tpu.matmul %23, %24, %cst_21 {dimension_numbers = #tpu.dot_dimension_numbers<[1], [0], [0], [1], [0, 0, 1, 1], [], []>} : vector<32x32xbf16>, vector<32x256xbf16>, vector<32x256xf32> -> vector<32x256xf32>
    %28 = vector.broadcast %26 : vector<32x1xf32> to vector<32x256xf32>
    %29 = arith.addf %27, %28 : vector<32x256xf32>
    %cst_22 = arith.constant -1.000000e+00 : f32
    %cst_23 = arith.constant 1.000000e+00 : f32
    %30 = vector.broadcast %cst_22 : f32 to vector<32x256xf32>
    %31 = arith.maximumf %30, %29 : vector<32x256xf32>
    %32 = vector.broadcast %cst_23 : f32 to vector<32x256xf32>
    %33 = arith.minimumf %32, %31 : vector<32x256xf32>
    %c2 = arith.constant 2 : index
    %c0_24 = arith.constant 0 : index
    %c0_25 = arith.constant 0 : index
    %34 = vector.load %arg4[%c2, %c0_24, %c0_25] : memref<5x32x32xbf16, #tpu.memory_space<vmem>>, vector<1x32x32xbf16>
    %35 = vector.shape_cast %34 : vector<1x32x32xbf16> to vector<32x32xbf16>
    %36 = arith.truncf %33 : vector<32x256xf32> to vector<32x256xbf16>
    %c2_26 = arith.constant 2 : index
    %c0_27 = arith.constant 0 : index
    %c0_28 = arith.constant 0 : index
    %37 = vector.load %arg5[%c2_26, %c0_27, %c0_28] : memref<5x32x1xf32, #tpu.memory_space<vmem>>, vector<1x32x1xf32>
    %38 = vector.shape_cast %37 : vector<1x32x1xf32> to vector<32x1xf32>
    %cst_29 = arith.constant dense<0.000000e+00> : vector<32x256xf32>
    %39 = tpu.matmul %35, %36, %cst_29 {dimension_numbers = #tpu.dot_dimension_numbers<[1], [0], [0], [1], [0, 0, 1, 1], [], []>} : vector<32x32xbf16>, vector<32x256xbf16>, vector<32x256xf32> -> vector<32x256xf32>
    %40 = vector.broadcast %38 : vector<32x1xf32> to vector<32x256xf32>
    %41 = arith.addf %39, %40 : vector<32x256xf32>
    %cst_30 = arith.constant -1.000000e+00 : f32
    %cst_31 = arith.constant 1.000000e+00 : f32
    %42 = vector.broadcast %cst_30 : f32 to vector<32x256xf32>
    %43 = arith.maximumf %42, %41 : vector<32x256xf32>
    %44 = vector.broadcast %cst_31 : f32 to vector<32x256xf32>
    %45 = arith.minimumf %44, %43 : vector<32x256xf32>
    %c3 = arith.constant 3 : index
    %c0_32 = arith.constant 0 : index
    %c0_33 = arith.constant 0 : index
    %46 = vector.load %arg4[%c3, %c0_32, %c0_33] : memref<5x32x32xbf16, #tpu.memory_space<vmem>>, vector<1x32x32xbf16>
    %47 = vector.shape_cast %46 : vector<1x32x32xbf16> to vector<32x32xbf16>
    %48 = arith.truncf %45 : vector<32x256xf32> to vector<32x256xbf16>
    %c3_34 = arith.constant 3 : index
    %c0_35 = arith.constant 0 : index
    %c0_36 = arith.constant 0 : index
    %49 = vector.load %arg5[%c3_34, %c0_35, %c0_36] : memref<5x32x1xf32, #tpu.memory_space<vmem>>, vector<1x32x1xf32>
    %50 = vector.shape_cast %49 : vector<1x32x1xf32> to vector<32x1xf32>
    %cst_37 = arith.constant dense<0.000000e+00> : vector<32x256xf32>
    %51 = tpu.matmul %47, %48, %cst_37 {dimension_numbers = #tpu.dot_dimension_numbers<[1], [0], [0], [1], [0, 0, 1, 1], [], []>} : vector<32x32xbf16>, vector<32x256xbf16>, vector<32x256xf32> -> vector<32x256xf32>
    %52 = vector.broadcast %50 : vector<32x1xf32> to vector<32x256xf32>
    %53 = arith.addf %51, %52 : vector<32x256xf32>
    %cst_38 = arith.constant -1.000000e+00 : f32
    %cst_39 = arith.constant 1.000000e+00 : f32
    %54 = vector.broadcast %cst_38 : f32 to vector<32x256xf32>
    %55 = arith.maximumf %54, %53 : vector<32x256xf32>
    %56 = vector.broadcast %cst_39 : f32 to vector<32x256xf32>
    %57 = arith.minimumf %56, %55 : vector<32x256xf32>
    %c4 = arith.constant 4 : index
    %c0_40 = arith.constant 0 : index
    %c0_41 = arith.constant 0 : index
    %58 = vector.load %arg4[%c4, %c0_40, %c0_41] : memref<5x32x32xbf16, #tpu.memory_space<vmem>>, vector<1x32x32xbf16>
    %59 = vector.shape_cast %58 : vector<1x32x32xbf16> to vector<32x32xbf16>
    %60 = arith.truncf %57 : vector<32x256xf32> to vector<32x256xbf16>
    %c4_42 = arith.constant 4 : index
    %c0_43 = arith.constant 0 : index
    %c0_44 = arith.constant 0 : index
    %61 = vector.load %arg5[%c4_42, %c0_43, %c0_44] : memref<5x32x1xf32, #tpu.memory_space<vmem>>, vector<1x32x1xf32>
    %62 = vector.shape_cast %61 : vector<1x32x1xf32> to vector<32x1xf32>
    %cst_45 = arith.constant dense<0.000000e+00> : vector<32x256xf32>
    %63 = tpu.matmul %59, %60, %cst_45 {dimension_numbers = #tpu.dot_dimension_numbers<[1], [0], [0], [1], [0, 0, 1, 1], [], []>} : vector<32x32xbf16>, vector<32x256xbf16>, vector<32x256xf32> -> vector<32x256xf32>
    %64 = vector.broadcast %62 : vector<32x1xf32> to vector<32x256xf32>
    %65 = arith.addf %63, %64 : vector<32x256xf32>
    %cst_46 = arith.constant -1.000000e+00 : f32
    %cst_47 = arith.constant 1.000000e+00 : f32
    %66 = vector.broadcast %cst_46 : f32 to vector<32x256xf32>
    %67 = arith.maximumf %66, %65 : vector<32x256xf32>
    %68 = vector.broadcast %cst_47 : f32 to vector<32x256xf32>
    %69 = arith.minimumf %68, %67 : vector<32x256xf32>
    %c0_48 = arith.constant 0 : index
    %c0_49 = arith.constant 0 : index
    %70 = vector.load %arg6[%c0_48, %c0_49] : memref<1x32xbf16, #tpu.memory_space<vmem>>, vector<1x32xbf16>
    %71 = arith.truncf %69 : vector<32x256xf32> to vector<32x256xbf16>
    %c0_50 = arith.constant 0 : index
    %c0_51 = arith.constant 0 : index
    %72 = vector.load %arg7[%c0_50, %c0_51] : memref<1x1xf32, #tpu.memory_space<vmem>>, vector<1x1xf32>
    %cst_52 = arith.constant dense<0.000000e+00> : vector<1x256xf32>
    %73 = tpu.matmul %70, %71, %cst_52 {dimension_numbers = #tpu.dot_dimension_numbers<[1], [0], [0], [1], [0, 0, 1, 1], [], []>} : vector<1x32xbf16>, vector<32x256xbf16>, vector<1x256xf32> -> vector<1x256xf32>
    %74 = vector.broadcast %72 : vector<1x1xf32> to vector<1x256xf32>
    %75 = arith.addf %73, %74 : vector<1x256xf32>
    %c0_53 = arith.constant 0 : index
    %c0_54 = arith.constant 0 : index
    %76 = vector.load %arg8[%c0_53, %c0_54] : memref<1x256xf32, #tpu.memory_space<vmem>>, vector<1x256xf32>
    tpu.vector_store %arg8[%c0_53, %c0_54], %75 {strides = array<i32>} : memref<1x256xf32, #tpu.memory_space<vmem>>, vector<1x256xf32>,
    return
  }
  func.func @transform_0(%arg0: i32) -> (i32, i32) {
    %c0_i32 = arith.constant 0 : i32
    %c0_i32_0 = arith.constant 0 : i32
    return %c0_i32, %arg0 : i32, i32
  }
  func.func @transform_1(%arg0: i32) -> (i32, i32) {
    %c0_i32 = arith.constant 0 : i32
    %c0_i32_0 = arith.constant 0 : i32
    %c0_i32_1 = arith.constant 0 : i32
    return %c0_i32, %c0_i32_0 : i32, i32
  }
  func.func @transform_2(%arg0: i32) -> (i32, i32) {
    %c0_i32 = arith.constant 0 : i32
    %c0_i32_0 = arith.constant 0 : i32
    %c0_i32_1 = arith.constant 0 : i32
    return %c0_i32, %c0_i32_0 : i32, i32
  }
  func.func @transform_3(%arg0: i32) -> (i32, i32, i32) {
    %c0_i32 = arith.constant 0 : i32
    %c0_i32_0 = arith.constant 0 : i32
    %c0_i32_1 = arith.constant 0 : i32
    %c0_i32_2 = arith.constant 0 : i32
    return %c0_i32, %c0_i32_0, %c0_i32_1 : i32, i32, i32
  }
  func.func @transform_4(%arg0: i32) -> (i32, i32, i32) {
    %c0_i32 = arith.constant 0 : i32
    %c0_i32_0 = arith.constant 0 : i32
    %c0_i32_1 = arith.constant 0 : i32
    %c0_i32_2 = arith.constant 0 : i32
    return %c0_i32, %c0_i32_0, %c0_i32_1 : i32, i32, i32
  }
  func.func @transform_5(%arg0: i32) -> (i32, i32) {
    %c0_i32 = arith.constant 0 : i32
    %c0_i32_0 = arith.constant 0 : i32
    %c0_i32_1 = arith.constant 0 : i32
    return %c0_i32, %c0_i32_0 : i32, i32
  }
  func.func @transform_6(%arg0: i32) -> (i32, i32) {
    %c0_i32 = arith.constant 0 : i32
    %c0_i32_0 = arith.constant 0 : i32
    %c0_i32_1 = arith.constant 0 : i32
    return %c0_i32, %c0_i32_0 : i32, i32
  }
  func.func @transform_7(%arg0: i32) -> (i32, i32) {
    %c0_i32 = arith.constant 0 : i32
    %c0_i32_0 = arith.constant 0 : i32
    return %c0_i32, %arg0 : i32, i32
  }
}

</mosaic_0001>

<bundles_post_ra>
// kernel: neural_net_forward.1
= control target key start
LH: loop header
LB: loop body
LE: loop exit
PB: predicated region body
PF: predicated region fallthrough
CT: control target
= control target key end

     0   :  { %s1741_s0 = inlined_call_operand.vmem [shape: bf16[16,512], index: 0, kind: input, shape index: {}]   ;;  %s1742_s1 = inlined_call_operand.vmem [shape: bf16[32,16], index: 1, kind: input, shape index: {}]   ;;  %s1743_s2 = inlined_call_operand.vmem [shape: f32[32,1], index: 2, kind: input, shape index: {}]   ;;  %s1744_s3 = inlined_call_operand.vmem [shape: bf16[5,32,32], index: 3, kind: input, shape index: {}]   ;;  %s1745_s4 = inlined_call_operand.vmem [shape: f32[5,32,1], index: 4, kind: input, shape index: {}]   ;;  %s1746_s5 = inlined_call_operand.vmem [shape: bf16[1,32], index: 5, kind: input, shape index: {}]   ;;  %s1747_s6 = inlined_call_operand.<no memory space> [shape: f32[1,1], index: 6, kind: input, shape index: {}]   ;;  %s1748_s7 = inlined_call_operand.hbm [shape: f32[1,512], index: 7, kind: output, shape index: {}]  }
   0x1   :  { %v12_v0 = vstv %s1747_s6 }
   0x2   :  { %13 = vst [vmem:[#allocation2] sm:$0x1] %v12_v0 }
   0x3   :  { %14 = vsyncpa [#allocation5], 0 }
   0x4   :  { %16 = vsyncpa [#allocation5 + $0x1], 0  ;;  %s1494_s26 = smov 0   ;;  %s1496_s27 = smov 0  }
   0x5   :  { %s1498_s28 = smov 0   ;;  %s1500_s29 = smov 0  }
   0x6 LB: > { %s1202_s6 = sadd.s32 4294967295, %s1446_s29   ;;  %s1203_s30 = sadd.s32 4294967294, %s1446_s29   ;;  %s1446_s29 = sphi %s1500_s29, %s1754_s29   ;;  %s1442_s28 = sphi %s1498_s28, %s1753_s28   ;;  %s1438_s27 = sphi %s1496_s27, %s1752_s27   ;;  %s1434_s26 = sphi %s1494_s26, %s1751_s26  }
   0x7   : > { %s1517_s8 = sadd.s32 1, %s1446_s29   ;;  %s29_s9 = sadd.s32 1, %s1442_s28 }
   0x8   : > { %s26_s10 = ssub.s32 %s1446_s29, %s1517_s8  ;;  %p36_p0 = scmp.ne.s32.totalorder %s1442_s28, %s1438_s27 }
   0x9   : > { %p27_p1 = scmp.eq.s32.totalorder %s26_s10, 0  ;;  %p37_p2 = scmp.eq.s32.totalorder %s1446_s29, 0 }
   0xa   : > { %p192_p3 = scmp.eq.s32.totalorder %s1202_s6, 1  ;;  %p197_p4 = scmp.ne.s32.totalorder %s1438_s27, %s1434_s26 }
   0xb   : > { %s1530_s11 = scalar_select %p27_p1, %s1442_s28, %s29_s9  }
   0xc   : > { %p38_p5 = por %p37_p2, %p36_p0  ;;  %p1532_p6 = por %p192_p3, %p36_p0 }
   0xd   : > { %p198_p7 = scmp.eq.s32.totalorder %s1203_s30, 1  ;;  %p1205_p9 = scmp.ge.s32.totalorder %s1446_s29, 2 }
   0xf   : > { %p1536_p8 = por %p198_p7, %p197_p4  ;;  %232 = sbr.rel (%p1205_p9) target bundleno = 29 (0x1d), region = 40 }
  0x16   : > { %235 = sbr.rel (!%p38_p5) target bundleno = 29 (0x1d), region = 44  ;;  %s237_s14 = sand.u32 (%p38_p5), 1, %s1442_s28  }
  0x17   : > { %s1324_s15 = sshll.u32 (%p38_p5), %s1446_s29, 3  ;;  %s1206_s16 = sshll.u32 (%p38_p5), %s237_s14, 4 }
  0x18   : > { %s242_s19 = scalar_lea.vmem (%p38_p5), %s1741_s0, %s1324_s15  ;;  %s239_s20 = scalar_lea.vmem (%p38_p5), [#allocation3], %s1206_s16 }
  0x19   : > { %v272_v1 = vld [vmem:[%s242_s19] sm:$0xff] (%p38_p5)  ;;  %v274_v2 = vld [vmem:[%s242_s19 + $0x10] sm:$0xff] (%p38_p5) }
  0x1a   : > { %273 = vst [vmem:[%s239_s20] sm:$0xff] (%p38_p5), %v272_v1  ;;  %275 = vst [vmem:[%s239_s20 + $0x8] sm:$0xff] (%p38_p5), %v274_v2 }
  0x1d PF: > { %p1209_p10 = scmp.ge.s32.totalorder %s1446_s29, 1  ;;  %p280_p11 = scmp.lt.s32.totalorder %s1446_s29, 3 }
  0x1f   : > { %p281_p12 = pnand %p1209_p10, %p280_p11 }
  0x20   : > { %s1551_s21 = sand.u32 (!%p281_p12), 1, %s1438_s27   ;;  %v1448_v3 = vmov (!%p281_p12), 0   ;;  %v327_v4 = vld [vmem:[%s1743_s2] sm:$0xff] (!%p281_p12)  ;;  %v328_v7 = vld [vmem:[%s1743_s2 + $0x8] sm:$0xff] (!%p281_p12)  ;;  %v329_v8 = vld [vmem:[%s1743_s2 + $0x10] sm:$0xff] (!%p281_p12)  ;;  %vm371_vm0 = vcmask (!%p281_p12), 130048  }
  0x21   : > { %284 = sbr.rel (%p281_p12) target bundleno = 1673 (0x689), region = 82  ;;  %s1210_s22 = sshll.u32 (!%p281_p12), %s1551_s21, 4  ;;  %410 = vmatprep.mubr.bf16.mxu0 (!%p281_p12), %v1448_v3  ;;  %1367 = vset.pattern.permute.xlu0 (!%p281_p12), %v1448_v3  ;;  %v1372_v9 = vld [vmem:[%s1742_s1] sm:$0xff] (!%p281_p12)   ;;  %v330_v10 = vld [vmem:[%s1743_s2 + $0x18] sm:$0xff] (!%p281_p12)  ;;  %v456_v12 = vld [vmem:[%s1745_s4 + $0x8] sm:$0xff] (!%p281_p12)  ;;  %vm489_vm1 = vcmask (!%p281_p12), 261120  }
  0x22   : > { %1368 = vset.pattern.permute.xlu1 (!%p281_p12), %v1448_v3  ;;  %528 = vmatprep.mubr.bf16.mxu1 (!%p281_p12), %v1448_v3  ;;  %s289_s25 = scalar_lea.vmem (!%p281_p12), [#allocation3], %s1210_s22  ;;  %v455_v11 = vld [vmem:[%s1745_s4] sm:$0xff] (!%p281_p12)  ;;  %v1373_v13 = vld [vmem:[%s1742_s1 + $0x8] sm:$0xff] (!%p281_p12)   ;;  %v457_v14 = vld [vmem:[%s1745_s4 + $0x10] sm:$0xff] (!%p281_p12)  ;;  %s1211_s10 = sshll.u32 (!%p281_p12), %s1551_s21, 1 }
  0x23   : > { %v1369_v5 = vld [vmem:[%s289_s25 + $0x4] ss:$8 sps:$4 sm:$0xff] (!%p281_p12)   ;;  %333 = vperm.xlu0 (!%p281_p12), %1367, %v327_v4   ;;  %v1371_v6 = vld [vmem:[%s289_s25] ss:$8 sps:$4 sm:$0xff] (!%p281_p12)   ;;  %343 = vperm.xlu1 (!%p281_p12), %1368, %v329_v8   ;;  %s1325_s14 = sshll.u32 (!%p281_p12), %s1202_s6, 5  ;;  %s317_s15 = scalar_lea.vmem (!%p281_p12), [#allocation4], %s1211_s10 }
  0x24   : > { %378 = vmatprep.subr.bf16.mxu0 (!%p281_p12), %v1369_v5  ;;  %v458_v15 = vld [vmem:[%s1745_s4 + $0x18] sm:$0xff] (!%p281_p12)  ;;  %v1242_v16 = vld [vmem:[%s1745_s4 + $0x20] sm:$0xff] (!%p281_p12)  ;;  %v1243_v17 = vld [vmem:[%s1745_s4 + $0x28] sm:$0xff] (!%p281_p12)  ;;  %s1138_s16 = sshll.u32 (!%p281_p12), %s317_s15, 4  ;;  %s1697_s19 = scalar_lea.hbm (!%p281_p12), %s1748_s7, %s1325_s14  ;;  %s1699_s16 = int_to_ptr.vmem [resolvable:$true] %s1138_s16 }
  0x25   : > { %379 = vmatpush1.bf16.msra.mxu0 (!%p281_p12), %v1371_v6  ;;  %v1244_v18 = vld [vmem:[%s1745_s4 + $0x30] sm:$0xff] (!%p281_p12)  ;;  %v1245_v19 = vld [vmem:[%s1745_s4 + $0x38] sm:$0xff] (!%p281_p12)  ;;  %v1262_v20 = vld [vmem:[%s1745_s4 + $0x40] sm:$0xff] (!%p281_p12)  ;;  %s1124_s20 = scalar_lea.sflag (!%p281_p12), [#allocation5], %s1551_s21  ;;  %s1384_s22 = scalar_lea.vmem (!%p281_p12), %s1699_s16, 32 }
  0x26   : > { %v1263_v21 = vld [vmem:[%s1745_s4 + $0x48] sm:$0xff] (!%p281_p12)  ;;  %v1264_v22 = vld [vmem:[%s1745_s4 + $0x50] sm:$0xff] (!%p281_p12)  ;;  %v1265_v23 = vld [vmem:[%s1745_s4 + $0x58] sm:$0xff] (!%p281_p12)  ;;  %p1385_p13 = scmp.ne.s32.totalorder (!%p281_p12), %s1699_s16, %s1384_s22  ;;  %s1450_s6 = smov (!%p281_p12), [#allocation4]  }
  0x27   : > { %338 = vperm.xlu0 (!%p281_p12), %1367, %v328_v7   ;;  %348 = vperm.xlu1 (!%p281_p12), %1368, %v330_v10   ;;  %v1282_v24 = vld [vmem:[%s1745_s4 + $0x60] sm:$0xff] (!%p281_p12)  ;;  %v1283_v25 = vld [vmem:[%s1745_s4 + $0x68] sm:$0xff] (!%p281_p12)  ;;  %v1284_v26 = vld [vmem:[%s1745_s4 + $0x70] sm:$0xff] (!%p281_p12)  ;;  %s1388_s23 = sshll.u32 (!%p281_p12), %s1450_s6, 4  ;;  %s1389_s23 = int_to_ptr.vmem [resolvable:$false] %s1388_s23 }
  0x28   : > { %1216 = vmatmul.mubr.msk.bf16.vlgmr.msra.gmra.mrb[0].mxu0 %vm371_vm0, %v1372_v9  ;;  %v1285_v27 = vld [vmem:[%s1745_s4 + $0x78] sm:$0xff]  ;;  %v1302_v28 = vld [vmem:[%s1745_s4 + $0x80] sm:$0xff]  ;;  %v1303_v29 = vld [vmem:[%s1745_s4 + $0x88] sm:$0xff]  ;;  %p1386_p0 = pnand %p1385_p13, %p1532_p6  ;;  %s1390_s24 = scalar_lea.vmem %s1389_s23, 64 }
  0x29   : > { %420 = vmatprep.mubr.bf16.mxu0 %v1448_v3  ;;  %v1304_v30 = vld [vmem:[%s1745_s4 + $0x90] sm:$0xff]  ;;  %v1305_v31 = vld [vmem:[%s1745_s4 + $0x98] sm:$0xff]  ;;  %v1046_v32 = vld [vmem:[#allocation2] sm:$0x1]  ;;  %p1391_p2 = scmp.lt.s32.totalorder %s1699_s16, %s1389_s23  ;;  %p1392_p3 = scmp.lt.s32.totalorder %s1390_s24, %s1384_s22 }
  0x2a   : > { %v1374_v1 = vld [vmem:[%s1744_s3] sm:$0xff]   ;;  %v1375_v2 = vld [vmem:[%s1744_s3 + $0x8] sm:$0xff]   ;;  %p1387_p1 = pneg %p1386_p0 }
  0x2b   : > { %461 = vperm.xlu0 %1367, %v455_v11   ;;  %466 = vperm.xlu1 %1368, %v456_v12   ;;  %p1393_p4 = por %p1392_p3, %p1391_p2 }
  0x2d   : > { %p1394_p5 = pnand %p1393_p4, %p1387_p1 }
  0x2f   : > { %471 = vperm.xlu0 %1367, %v457_v14   ;;  %476 = vperm.xlu1 %1368, %v458_v15  }
  0x30   : > { %1217 = vmatmul.mubr.msk.bf16.gmra.mrb[4].mxu0 %vm371_vm0, %v1373_v13 }
  0x31   : > { %647 = vmatprep.mubr.bf16.mxu0 %v1448_v3 }
  0x33   : > { %581 = vperm.xlu0 %1367, %v1242_v16   ;;  %586 = vperm.xlu1 %1368, %v1243_v17  }
  0x37   : > { %591 = vperm.xlu0 %1367, %v1244_v18   ;;  %596 = vperm.xlu1 %1368, %v1245_v19  }
  0x3b   : > { %700 = vperm.xlu0 %1367, %v1262_v20   ;;  %705 = vperm.xlu1 %1368, %v1263_v21  }
  0x3f   : > { %710 = vperm.xlu0 %1367, %v1264_v22   ;;  %715 = vperm.xlu1 %1368, %v1265_v23  }
  0x43   : > { %819 = vperm.xlu0 %1367, %v1282_v24   ;;  %824 = vperm.xlu1 %1368, %v1283_v25  }
  0x47   : > { %829 = vperm.xlu0 %1367, %v1284_v26   ;;  %834 = vperm.xlu1 %1368, %v1285_v27  }
  0x4b   : > { %938 = vperm.xlu0 %1367, %v1302_v28   ;;  %943 = vperm.xlu1 %1368, %v1303_v29  }
  0x4f   : > { %948 = vperm.xlu0 %1367, %v1304_v30   ;;  %953 = vperm.xlu1 %1368, %v1305_v31  }
  0x53   : > { %1049 = vperm.xlu0 %1367, %v1046_v32  }
  0xa2   : > { %v334_v33 = vpop.permute.xlu0 %333  ;;  %v344_v42 = vpop.permute.xlu1 %343 }
  0xa6   : > { %v339_v37 = vpop.permute.xlu0 %338  ;;  %v349_v53 = vpop.permute.xlu1 %348 }
  0xaa   : > { %v462_v4 = vpop.permute.xlu0 %461  ;;  %v467_v8 = vpop.permute.xlu1 %466 }
  0xae   : > { %v472_v19 = vpop.permute.xlu0 %471  ;;  %v477_v24 = vpop.permute.xlu1 %476 }
  0xfb   : > { %v412_v34 = vpop.f32.mrb[0].mxu0 }
  0xfc   : > { %v413_v35 = vadd.f32 %v412_v34, %v334_v33  ;;  %v414_v36 = vpop.f32.mrb[1].mxu0 }
  0xfd   : > { %v415_v38 = vadd.f32 %v414_v36, %v334_v33  ;;  %v416_v39 = vpop.f32.mrb[2].mxu0  ;;  %v1376_v36 = vld [vmem:[%s1744_s3 + $0x10] sm:$0xff]  }
  0xfe   : > { %v417_v40 = vadd.f32 %v416_v39, %v339_v37  ;;  %v418_v41 = vpop.f32.mrb[3].mxu0  ;;  %v1218_v44 = vclamps-f32 %v413_v35, 1.0 }
  0xff   : > { %v419_v43 = vadd.f32 %v418_v41, %v339_v37  ;;  %v1219_v46 = vclamps-f32 %v415_v38, 1.0  ;;  %v1377_v37 = vld [vmem:[%s1744_s3 + $0x18] sm:$0xff]   ;;  %v582_v38 = vpop.permute.xlu0 %581 }
 0x100   : > { %v1220_v45 = vclamps-f32 %v417_v40, 1.0 }
 0x101   : > { %v1221_v47 = vclamps-f32 %v419_v43, 1.0 }
 0x102   : > { %v451_v48 = vpack.c.bf16 %v1220_v45, %v1218_v44 }
 0x103   : > { %v422_v49 = vpop.f32.mrb[4].mxu0  ;;  %v452_v50 = vpack.c.bf16 %v1221_v47, %v1219_v46 }
 0x104   : > { %v423_v51 = vadd.f32 %v422_v49, %v344_v42  ;;  %v424_v52 = vpop.f32.mrb[5].mxu0 }
 0x105   : > { %v425_v54 = vadd.f32 %v424_v52, %v344_v42  ;;  %v426_v55 = vpop.f32.mrb[6].mxu0  ;;  %496 = vmatprep.subr.bf16.mxu1 %v452_v50  ;;  %v587_v42 = vpop.permute.xlu1 %586 }
 0x106   : > { %v427_v56 = vadd.f32 %v426_v55, %v349_v53  ;;  %v428_v57 = vpop.f32.mrb[7].mxu0  ;;  %497 = vmatpush1.bf16.msra.mxu1 %v451_v48  ;;  %v1222_v59 = vclamps-f32 %v423_v51, 1.0 }
 0x107   : > { %v429_v58 = vadd.f32 %v428_v57, %v349_v53  ;;  %v1223_v61 = vclamps-f32 %v425_v54, 1.0  ;;  %v592_v53 = vpop.permute.xlu0 %591 }
 0x108   : > { %v1224_v60 = vclamps-f32 %v427_v56, 1.0 }
 0x109   : > { %v1225_v62 = vclamps-f32 %v429_v58, 1.0  ;;  %v597_v58 = vpop.permute.xlu1 %596 }
 0x10a   : > { %v453_v63 = vpack.c.bf16 %v1224_v60, %v1222_v59 }
 0x10b   : > { %v454_v0 = vpack.c.bf16 %v1225_v62, %v1223_v61 }
 0x10d   : > { %498 = vmatprep.subr.bf16.mxu1 %v454_v0 }
 0x10e   : > { %499 = vmatpush1.bf16.msra.mxu1 %v453_v63 }
 0x111   : > { %1228 = vmatmul.mubr.msk.bf16.vlgmr.msra.gmra.mrb[0].mxu1 %vm489_vm1, %v1374_v1 }
 0x112   : > { %538 = vmatprep.mubr.bf16.mxu1 %v1448_v3 }
 0x119   : > { %1229 = vmatmul.mubr.msk.bf16.gmra.mrb[4].mxu1 %vm489_vm1, %v1375_v2 }
 0x11a   : > { %766 = vmatprep.mubr.bf16.mxu1 %v1448_v3 }
 0x1e4   : > { %v530_v5 = vpop.f32.mrb[0].mxu1 }
 0x1e5   : > { %v531_v6 = vadd.f32 %v530_v5, %v462_v4  ;;  %v532_v7 = vpop.f32.mrb[1].mxu1 }
 0x1e6   : > { %v533_v9 = vadd.f32 %v532_v7, %v462_v4  ;;  %v534_v10 = vpop.f32.mrb[2].mxu1  ;;  %v1378_v7 = vld [vmem:[%s1744_s3 + $0x20] sm:$0xff]  }
 0x1e7   : > { %v535_v11 = vadd.f32 %v534_v10, %v467_v8  ;;  %v536_v12 = vpop.f32.mrb[3].mxu1  ;;  %v1230_v14 = vclamps-f32 %v531_v6, 1.0 }
 0x1e8   : > { %v537_v13 = vadd.f32 %v536_v12, %v467_v8  ;;  %v1231_v16 = vclamps-f32 %v533_v9, 1.0  ;;  %v1379_v8 = vld [vmem:[%s1744_s3 + $0x28] sm:$0xff]   ;;  %v701_v9 = vpop.permute.xlu0 %700 }
 0x1e9   : > { %v1232_v15 = vclamps-f32 %v535_v11, 1.0 }
 0x1ea   : > { %v1233_v17 = vclamps-f32 %v537_v13, 1.0  ;;  %v706_v13 = vpop.permute.xlu1 %705 }
 0x1eb   : > { %v570_v18 = vpack.c.bf16 %v1232_v15, %v1230_v14 }
 0x1ec   : > { %v571_v20 = vpack.c.bf16 %v1233_v17, %v1231_v16  ;;  %v540_v21 = vpop.f32.mrb[4].mxu1 }
 0x1ed   : > { %v541_v22 = vadd.f32 %v540_v21, %v472_v19  ;;  %v542_v23 = vpop.f32.mrb[5].mxu1 }
 0x1ee   : > { %v543_v25 = vadd.f32 %v542_v23, %v472_v19  ;;  %v544_v26 = vpop.f32.mrb[6].mxu1  ;;  %615 = vmatprep.subr.bf16.mxu0 %v571_v20 }
 0x1ef   : > { %v545_v27 = vadd.f32 %v544_v26, %v477_v24  ;;  %v546_v28 = vpop.f32.mrb[7].mxu1  ;;  %616 = vmatpush1.bf16.msra.mxu0 %v570_v18  ;;  %v1234_v30 = vclamps-f32 %v541_v22, 1.0 }
 0x1f0   : > { %v547_v29 = vadd.f32 %v546_v28, %v477_v24  ;;  %v1235_v32 = vclamps-f32 %v543_v25, 1.0  ;;  %v711_v24 = vpop.permute.xlu0 %710 }
 0x1f1   : > { %v1236_v31 = vclamps-f32 %v545_v27, 1.0 }
 0x1f2   : > { %v1237_v33 = vclamps-f32 %v547_v29, 1.0  ;;  %v716_v29 = vpop.permute.xlu1 %715 }
 0x1f3   : > { %v572_v34 = vpack.c.bf16 %v1236_v31, %v1234_v30 }
 0x1f4   : > { %v573_v35 = vpack.c.bf16 %v1237_v33, %v1235_v32 }
 0x1f6   : > { %617 = vmatprep.subr.bf16.mxu0 %v573_v35 }
 0x1f7   : > { %618 = vmatpush1.bf16.msra.mxu0 %v572_v34 }
 0x1fa   : > { %1248 = vmatmul.mubr.msk.bf16.vlgmr.msra.gmra.mrb[8].mxu0 %vm489_vm1, %v1376_v36 }
 0x1fb   : > { %657 = vmatprep.mubr.bf16.mxu0 %v1448_v3 }
 0x202   : > { %1249 = vmatmul.mubr.msk.bf16.gmra.mrb[12].mxu0 %vm489_vm1, %v1377_v37 }
 0x203   : > { %885 = vmatprep.mubr.bf16.mxu0 %v1448_v3 }
 0x2cd   : > { %v649_v39 = vpop.f32.mrb[8].mxu0 }
 0x2ce   : > { %v650_v40 = vadd.f32 %v649_v39, %v582_v38  ;;  %v651_v41 = vpop.f32.mrb[9].mxu0 }
 0x2cf   : > { %v652_v43 = vadd.f32 %v651_v41, %v582_v38  ;;  %v653_v44 = vpop.f32.mrb[10].mxu0  ;;  %v1380_v41 = vld [vmem:[%s1744_s3 + $0x30] sm:$0xff]  }
 0x2d0   : > { %v654_v45 = vadd.f32 %v653_v44, %v587_v42  ;;  %v655_v46 = vpop.f32.mrb[11].mxu0  ;;  %v1250_v48 = vclamps-f32 %v650_v40, 1.0 }
 0x2d1   : > { %v656_v47 = vadd.f32 %v655_v46, %v587_v42  ;;  %v1251_v50 = vclamps-f32 %v652_v43, 1.0  ;;  %v1381_v42 = vld [vmem:[%s1744_s3 + $0x38] sm:$0xff]   ;;  %v820_v43 = vpop.permute.xlu0 %819 }
 0x2d2   : > { %v1252_v49 = vclamps-f32 %v654_v45, 1.0 }
 0x2d3   : > { %v1253_v51 = vclamps-f32 %v656_v47, 1.0  ;;  %v825_v47 = vpop.permute.xlu1 %824 }
 0x2d4   : > { %v689_v52 = vpack.c.bf16 %v1252_v49, %v1250_v48 }
 0x2d5   : > { %v690_v54 = vpack.c.bf16 %v1253_v51, %v1251_v50  ;;  %v659_v55 = vpop.f32.mrb[12].mxu0 }
 0x2d6   : > { %v660_v56 = vadd.f32 %v659_v55, %v592_v53  ;;  %v661_v57 = vpop.f32.mrb[13].mxu0 }
 0x2d7   : > { %v662_v59 = vadd.f32 %v661_v57, %v592_v53  ;;  %v663_v60 = vpop.f32.mrb[14].mxu0  ;;  %734 = vmatprep.subr.bf16.mxu1 %v690_v54 }
 0x2d8   : > { %v664_v61 = vadd.f32 %v663_v60, %v597_v58  ;;  %v665_v62 = vpop.f32.mrb[15].mxu0  ;;  %735 = vmatpush1.bf16.msra.mxu1 %v689_v52  ;;  %v1254_v0 = vclamps-f32 %v660_v56, 1.0 }
 0x2d9   : > { %v666_v63 = vadd.f32 %v665_v62, %v597_v58  ;;  %v1255_v2 = vclamps-f32 %v662_v59, 1.0  ;;  %v830_v58 = vpop.permute.xlu0 %829 }
 0x2da   : > { %v1256_v1 = vclamps-f32 %v664_v61, 1.0 }
 0x2db   : > { %v1257_v4 = vclamps-f32 %v666_v63, 1.0  ;;  %v835_v63 = vpop.permute.xlu1 %834 }
 0x2dc   : > { %v691_v5 = vpack.c.bf16 %v1256_v1, %v1254_v0 }
 0x2dd   : > { %v692_v6 = vpack.c.bf16 %v1257_v4, %v1255_v2 }
 0x2df   : > { %736 = vmatprep.subr.bf16.mxu1 %v692_v6 }
 0x2e0   : > { %737 = vmatpush1.bf16.msra.mxu1 %v691_v5 }
 0x2e3   : > { %1268 = vmatmul.mubr.msk.bf16.vlgmr.msra.gmra.mrb[8].mxu1 %vm489_vm1, %v1378_v7 }
 0x2e4   : > { %776 = vmatprep.mubr.bf16.mxu1 %v1448_v3 }
 0x2eb   : > { %1269 = vmatmul.mubr.msk.bf16.gmra.mrb[12].mxu1 %vm489_vm1, %v1379_v8 }
 0x2ec   : > { %1004 = vmatprep.mubr.bf16.mxu1 %v1448_v3 }
 0x3b6   : > { %v768_v10 = vpop.f32.mrb[8].mxu1 }
 0x3b7   : > { %v769_v11 = vadd.f32 %v768_v10, %v701_v9  ;;  %v770_v12 = vpop.f32.mrb[9].mxu1 }
 0x3b8   : > { %v771_v14 = vadd.f32 %v770_v12, %v701_v9  ;;  %v772_v15 = vpop.f32.mrb[10].mxu1  ;;  %v1382_v12 = vld [vmem:[%s1744_s3 + $0x40] sm:$0xff]  }
 0x3b9   : > { %v773_v16 = vadd.f32 %v772_v15, %v706_v13  ;;  %v774_v17 = vpop.f32.mrb[11].mxu1  ;;  %v1270_v19 = vclamps-f32 %v769_v11, 1.0 }
 0x3ba   : > { %v775_v18 = vadd.f32 %v774_v17, %v706_v13  ;;  %v1271_v21 = vclamps-f32 %v771_v14, 1.0  ;;  %v1383_v13 = vld [vmem:[%s1744_s3 + $0x48] sm:$0xff]   ;;  %v939_v14 = vpop.permute.xlu0 %938 }
 0x3bb   : > { %v1272_v20 = vclamps-f32 %v773_v16, 1.0 }
 0x3bc   : > { %v1273_v22 = vclamps-f32 %v775_v18, 1.0  ;;  %v944_v18 = vpop.permute.xlu1 %943 }
 0x3bd   : > { %v808_v23 = vpack.c.bf16 %v1272_v20, %v1270_v19 }
 0x3be   : > { %v809_v25 = vpack.c.bf16 %v1273_v22, %v1271_v21  ;;  %v778_v26 = vpop.f32.mrb[12].mxu1 }
 0x3bf   : > { %v779_v27 = vadd.f32 %v778_v26, %v711_v24  ;;  %v780_v28 = vpop.f32.mrb[13].mxu1 }
 0x3c0   : > { %v781_v30 = vadd.f32 %v780_v28, %v711_v24  ;;  %v782_v31 = vpop.f32.mrb[14].mxu1  ;;  %853 = vmatprep.subr.bf16.mxu0 %v809_v25  ;;  %v949_v28 = vpop.permute.xlu0 %948 }
 0x3c1   : > { %v783_v32 = vadd.f32 %v782_v31, %v716_v29  ;;  %v784_v33 = vpop.f32.mrb[15].mxu1  ;;  %854 = vmatpush1.bf16.msra.mxu0 %v808_v23  ;;  %v1274_v35 = vclamps-f32 %v779_v27, 1.0 }
 0x3c2   : > { %v785_v34 = vadd.f32 %v784_v33, %v716_v29  ;;  %v1275_v37 = vclamps-f32 %v781_v30, 1.0  ;;  %v954_v33 = vpop.permute.xlu1 %953 }
 0x3c3   : > { %v1276_v36 = vclamps-f32 %v783_v32, 1.0 }
 0x3c4   : > { %v1277_v38 = vclamps-f32 %v785_v34, 1.0 }
 0x3c5   : > { %v810_v39 = vpack.c.bf16 %v1276_v36, %v1274_v35 }
 0x3c6   : > { %v811_v40 = vpack.c.bf16 %v1277_v38, %v1275_v37 }
 0x3c8   : > { %855 = vmatprep.subr.bf16.mxu0 %v811_v40 }
 0x3c9   : > { %856 = vmatpush1.bf16.msra.mxu0 %v810_v39 }
 0x3cc   : > { %1288 = vmatmul.mubr.msk.bf16.vlgmr.msra.gmra.mrb[16].mxu0 %vm489_vm1, %v1380_v41 }
 0x3cd   : > { %895 = vmatprep.mubr.bf16.mxu0 %v1448_v3 }
 0x3d4   : > { %1289 = vmatmul.mubr.msk.bf16.gmra.mrb[20].mxu0 %vm489_vm1, %v1381_v42 }
 0x3d5   : > { %1091 = vmatprep.mubr.bf16.mxu0 %v1448_v3 }
 0x49f   : > { %v887_v44 = vpop.f32.mrb[16].mxu0 }
 0x4a0   : > { %v888_v45 = vadd.f32 %v887_v44, %v820_v43  ;;  %v889_v46 = vpop.f32.mrb[17].mxu0 }
 0x4a1   : > { %v890_v48 = vadd.f32 %v889_v46, %v820_v43  ;;  %v891_v49 = vpop.f32.mrb[18].mxu0  ;;  %v1052_v46 = vlaneseq }
 0x4a2   : > { %v892_v50 = vadd.f32 %v891_v49, %v825_v47  ;;  %v893_v51 = vpop.f32.mrb[19].mxu0  ;;  %v1290_v53 = vclamps-f32 %v888_v45, 1.0  ;;  %v1041_v45 = vld [vmem:[%s1746_s5] sm:$0x1] }
 0x4a3   : > { %v894_v52 = vadd.f32 %v893_v51, %v825_v47  ;;  %v1291_v55 = vclamps-f32 %v890_v48, 1.0  ;;  %v1053_v47 = vshrl.u32 %v1052_v46, 7  ;;  %v1449_v48 = vmov 1966171168   ;;  %v1050_v51 = vpop.permute.xlu0 %1049 }
 0x4a4   : > { %v1292_v54 = vclamps-f32 %v892_v50, 1.0  ;;  %v1104_v49 = vunpack.c.l.s4 %v1449_v48  ;;  %vm1120_vm2 = vcmp.lt.s32.totalorder %v1052_v46, 256 }
 0x4a5   : > { %v1293_v56 = vclamps-f32 %v894_v52, 1.0  ;;  %v1054_v50 = vsub.s32 0, %v1053_v47 }
 0x4a6   : > { %v927_v57 = vpack.c.bf16 %v1292_v54, %v1290_v53  ;;  %v1105_v52 = vunpack.c.0.s8 %v1104_v49 }
 0x4a7   : > { %v928_v59 = vpack.c.bf16 %v1293_v56, %v1291_v55  ;;  %v897_v60 = vpop.f32.mrb[20].mxu0  ;;  %v1055_v53 = vrot.slane %v1050_v51, %v1054_v50 }
 0x4a8   : > { %v898_v61 = vadd.f32 %v897_v60, %v830_v58  ;;  %v899_v62 = vpop.f32.mrb[21].mxu0 }
 0x4a9   : > { %v900_v0 = vadd.f32 %v899_v62, %v830_v58  ;;  %v901_v1 = vpop.f32.mrb[22].mxu0  ;;  %972 = vmatprep.subr.bf16.mxu1 %v928_v59  ;;  %v1108_v58 = vsub.s32 %v1105_v52, %v1053_v47 }
 0x4aa   : > { %v902_v2 = vadd.f32 %v901_v1, %v835_v63  ;;  %v903_v4 = vpop.f32.mrb[23].mxu0  ;;  %973 = vmatpush1.bf16.msra.mxu1 %v927_v57  ;;  %v1294_v6 = vclamps-f32 %v898_v61, 1.0 }
 0x4ab   : > { %v904_v5 = vadd.f32 %v903_v4, %v835_v63  ;;  %v1295_v8 = vclamps-f32 %v900_v0, 1.0 }
 0x4ac   : > { %v1296_v7 = vclamps-f32 %v902_v2, 1.0 }
 0x4ad   : > { %v1297_v9 = vclamps-f32 %v904_v5, 1.0 }
 0x4ae   : > { %v929_v10 = vpack.c.bf16 %v1296_v7, %v1294_v6 }
 0x4af   : > { %v930_v11 = vpack.c.bf16 %v1297_v9, %v1295_v8 }
 0x4b1   : > { %974 = vmatprep.subr.bf16.mxu1 %v930_v11 }
 0x4b2   : > { %975 = vmatpush1.bf16.msra.mxu1 %v929_v10 }
 0x4b5   : > { %1308 = vmatmul.mubr.msk.bf16.vlgmr.msra.gmra.mrb[16].mxu1 %vm489_vm1, %v1382_v12 }
 0x4b6   : > { %1014 = vmatprep.mubr.bf16.mxu1 %v1448_v3 }
 0x4bd   : > { %1309 = vmatmul.mubr.msk.bf16.gmra.mrb[20].mxu1 %vm489_vm1, %v1383_v13 }
 0x588   : > { %v1006_v15 = vpop.f32.mrb[16].mxu1 }
 0x589   : > { %v1007_v16 = vadd.f32 %v1006_v15, %v939_v14  ;;  %v1008_v17 = vpop.f32.mrb[17].mxu1 }
 0x58a   : > { %v1009_v19 = vadd.f32 %v1008_v17, %v939_v14  ;;  %v1010_v20 = vpop.f32.mrb[18].mxu1 }
 0x58b   : > { %v1011_v21 = vadd.f32 %v1010_v20, %v944_v18  ;;  %v1012_v22 = vpop.f32.mrb[19].mxu1  ;;  %v1310_v24 = vclamps-f32 %v1007_v16, 1.0 }
 0x58c   : > { %v1013_v23 = vadd.f32 %v1012_v22, %v944_v18  ;;  %v1311_v26 = vclamps-f32 %v1009_v19, 1.0 }
 0x58d   : > { %v1312_v25 = vclamps-f32 %v1011_v21, 1.0 }
 0x58e   : > { %v1313_v3 = vclamps-f32 %v1013_v23, 1.0 }
 0x58f   : > { %v1042_v27 = vpack.c.bf16 %v1312_v25, %v1310_v24 }
 0x590   : > { %v1043_v29 = vpack.c.bf16 %v1313_v3, %v1311_v26  ;;  %v1016_v30 = vpop.f32.mrb[20].mxu1 }
 0x591   : > { %v1017_v31 = vadd.f32 %v1016_v30, %v949_v28  ;;  %v1018_v32 = vpop.f32.mrb[21].mxu1 }
 0x592   : > { %v1019_v34 = vadd.f32 %v1018_v32, %v949_v28  ;;  %v1020_v35 = vpop.f32.mrb[22].mxu1  ;;  %1059 = vmatprep.subr.bf16.mxu0 %v1043_v29 }
 0x593   : > { %v1021_v36 = vadd.f32 %v1020_v35, %v954_v33  ;;  %v1022_v37 = vpop.f32.mrb[23].mxu1  ;;  %1060 = vmatpush1.bf16.msra.mxu0 %v1042_v27  ;;  %v1314_v39 = vclamps-f32 %v1017_v31, 1.0 }
 0x594   : > { %v1023_v38 = vadd.f32 %v1022_v37, %v954_v33  ;;  %v1315_v41 = vclamps-f32 %v1019_v34, 1.0 }
 0x595   : > { %v1316_v40 = vclamps-f32 %v1021_v36, 1.0 }
 0x596   : > { %v1317_v42 = vclamps-f32 %v1023_v38, 1.0 }
 0x597   : > { %v1044_v43 = vpack.c.bf16 %v1316_v40, %v1314_v39 }
 0x598   : > { %v1045_v44 = vpack.c.bf16 %v1317_v42, %v1315_v41 }
 0x59a   : > { %1061 = vmatprep.subr.bf16.mxu0 %v1045_v44 }
 0x59b   : > { %1062 = vmatpush1.bf16.msra.mxu0 %v1044_v43 }
 0x59e   : > { %1318 = vmatmul.mubr.msk.bf16.vlgmr.msra.gmra.mrb[24].mxu0 %vm489_vm1, %v1041_v45 }
 0x671   : > { %v1093_v54 = vpop.f32.mrb[24].mxu0 }
 0x672   : > { %v1094_v55 = vadd.f32 %v1093_v54, %v1055_v53  ;;  %v1095_v56 = vpop.f32.mrb[25].mxu0 }
 0x673   : > { %v1096_v57 = vadd.f32 %v1095_v56, %v1055_v53  ;;  %v1097_v59 = vpop.f32.mrb[26].mxu0 }
 0x674   : > { %v1098_v60 = vpop.f32.mrb[27].mxu0 }
 0x675   : > { %v1102_v61 = vcombine.low %v1094_v55, %v1096_v57 }
 0x677   : > { %v1109_v62 = vrot.slane %v1102_v61, %v1108_v58 }
 0x679   : > { %v1116_v63 = vrot.slane %v1109_v62, %v1108_v58 }
 0x67b   : > { %1122 = vst.msk [vmem:[%s317_s15] sm:$0x3] %vm1120_vm2, %v1116_v63 }
 0x67c   : > { %1397 = shalt.err (!%p1394_p5)
}
 0x67d   : > { %s1398_s21 = scalar_lea.hbm %s1697_s19, 32  ;;  %s1402_s9 = scalar_lea.hbm %s1748_s7, 64 }
 0x67e   : > { %p1399_p7 = scmp.ne.s32.totalorder %s1697_s19, %s1398_s21  ;;  %p1403_p12 = scmp.lt.u32.totalorder %s1697_s19, %s1748_s7 }
 0x67f   : > { %p1404_p13 = scmp.lt.u32.totalorder %s1402_s9, %s1398_s21  ;;  %p1406_p1 = scmp.lt.u32.totalorder %s1398_s21, %s1697_s19 }
 0x680   : > { %p1400_p10 = pnand %p1399_p7, %p1532_p6 }
 0x681   : > { %p1405_p0 = por %p1404_p13, %p1403_p12 }
 0x682   : > { %p1401_p11 = pneg %p1400_p10 }
 0x683   : > { %p1407_p2 = por %p1406_p1, %p1405_p0 }
 0x685   : > { %p1408_p3 = pnand %p1407_p2, %p1401_p11 }
 0x687   : > { %1411 = shalt.err (!%p1408_p3)
}
 0x688   : > { %1326 = dma.vmem_to_hbm [thread:$0]  (%p1532_p6), %s1699_s16, 32, %s1697_s19, %s1124_s20  }
 0x689 PF: > { %s1150_s15 = sand.u32 1, %s1434_s26   ;;  %p1329_p4 = pnand %p1205_p9, %p1536_p8 }
 0x68a   : > { %s1151_s17 = scalar_lea.sflag [#allocation5], %s1150_s15 }
 0x68b   : > { %1429 = dma.done.wait (!%p1329_p4), %s1151_s17, 32  }
 0x68c   : > { %1431 = vsyncadd (!%p1329_p4), %s1151_s17, 4294967264  ;;  %p19_p5 = scmp.ge.s32.totalorder %s1517_s8, 4   ;;  %s1751_s26 = smov %s1438_s27 }
 0x68d   : > { %s1752_s27 = smov %s1442_s28  ;;  %s1753_s28 = smov %s1530_s11 }
 0x68e   : > { %s1754_s29 = smov %s1517_s8  ;;  %21 = sbr.rel (!%p19_p5) target bundleno = 6 (0x6), region = 134 }
 0x695   :  { %1156 = vsyncpa [#allocation5], 1 }
 0x696   :  { %1158 = vsyncpa [#allocation5 + $0x1], 1 }

</bundles_post_ra>
